<compile_context>
chip_gen: v7x
topology: tpu7x:2x2x1
jax: 0.10.0
libtpu: 0.0.40
codegen_flags: <defaults>
</compile_context>

<pallas_src>
import numpy as np
import jax
import jax.numpy as jnp
from jax.experimental import pallas as pl
from jax.experimental.pallas import tpu as pltpu

KH = KW = 7      # nn.Conv2d(1, 1, kernel_size=7, stride=3)
STRIDE = 3


def _bilinear_matrix(out_size, in_size):
    """Matrix R (out, in) s.t. R @ v == F.interpolate(v, mode='bilinear', align_corners=False)."""
    R = np.zeros((out_size, in_size), np.float32)
    scale = in_size / out_size
    for i in range(out_size):
        src = max((i + 0.5) * scale - 0.5, 0.0)
        i0 = min(int(np.floor(src)), in_size - 1)
        i1 = min(i0 + 1, in_size - 1)
        frac = src - i0
        R[i, i0] += 1.0 - frac
        R[i, i1] += frac
    return R


def _gather_onehots(H, W, Ho, Wo):
    """Static 0/1 selectors: Ph[kh, 3*oh+kh, oh] = 1, Pw[kw, 3*ow+kw, ow] = 1."""
    Ph = np.zeros((KH, H, Ho), np.float32)
    Pw = np.zeros((KW, W, Wo), np.float32)
    for kh in range(KH):
        for oh in range(Ho):
            Ph[kh, STRIDE * oh + kh, oh] = 1.0
    for kw in range(KW):
        for ow in range(Wo):
            Pw[kw, STRIDE * ow + kw, ow] = 1.0
    return Ph, Pw


def _ramm2_kernel(x_ref, k_ref, ut_ref, t_ref, b7_ref, b1d_ref, o_ref):
    f32 = jnp.float32
    x = x_ref[...]                       # (B, C, HW): lane-dense block of samples
    B, C, HW = x.shape
    inv_hw = 1.0 / HW
    inv_c = 1.0 / C

    # ---- ECCALayer channel statistics: fused single pass (std + mean) ----------------
    s1 = jnp.sum(x, axis=2)                              # (B, C)
    s2 = jnp.sum(x * x, axis=2)                          # (B, C)
    mu = s1 * inv_hw
    var = jnp.maximum(s2 * inv_hw - mu * mu, 0.0)        # guard tiny negatives
    y = jnp.sqrt(var) + mu                               # contrast + avg_pool, (B, C)

    # Conv1d(1,1,3,padding=1) along the channel axis == y @ T (tridiagonal).
    # The (B,C)x(C,C) tile is tiny, so exact f32 accumulation is free.
    z = jnp.dot(y, t_ref[...], preferred_element_type=f32,
                precision=jax.lax.Precision.HIGHEST) + b1d_ref[0]
    gate = jax.nn.sigmoid(z)                             # (B, C)

    # ---- spatial attention: channel mean -> 7x7 stride-3 conv -> bilinear upsample ---
    # Both linear maps are pre-folded into K (HW, Ho*Wo) and UT (Ho*Wo, HW), so this is
    # two lane-dense MXU matmuls on flat spatial data (f32 accumulation).
    sa_mean = jnp.sum(x, axis=1) * inv_c                                  # (B, HW)
    conv = jnp.dot(sa_mean, k_ref[...], preferred_element_type=f32) + b7_ref[0]   # (B, Ho*Wo)
    sa = jnp.dot(conv, ut_ref[...], preferred_element_type=f32)                   # (B, HW)

    # ---- combine: att = sigmoid(x * sigmoid(z) + sa); out = x * att -------------------
    ca = x * gate[:, :, None]
    att = jax.nn.sigmoid(ca + sa[:, None, :])
    o_ref[...] = x * att


def ramm2_forward(x, w7, b7, w1d, b1d):
    N, C, H, W = x.shape
    Ho = (H - KH) // STRIDE + 1
    Wo = (W - KW) // STRIDE + 1
    assert Ho >= 1 and Wo >= 1, "spatial dims must be >= 7 for the stride-3 7x7 conv"
    HW = H * W
    P = Ho * Wo

    x = x.astype(jnp.float32)
    w7 = w7.astype(jnp.float32)
    b7 = b7.astype(jnp.float32)
    w1d = w1d.astype(jnp.float32)
    b1d = b1d.astype(jnp.float32)

    # ---- host-side constant folding (outside the kernel, executed once by XLA) --------
    Ph, Pw = _gather_onehots(H, W, Ho, Wo)
    Rh = _bilinear_matrix(H, Ho)          # (H, Ho)
    Rw = _bilinear_matrix(W, Wo)          # (W, Wo)
    hi = jax.lax.Precision.HIGHEST        # exact one-time tiny einsums
    # K[(r*W+c), (oh*Wo+ow)] = w7[kh,kw] where r = 3*oh+kh, c = 3*ow+kw  (strided 7x7 conv)
    K = jnp.einsum('ij,iro,jcp->rcop', w7, jnp.asarray(Ph), jnp.asarray(Pw),
                   precision=hi).reshape(HW, P)
    # UT[(oh*Wo+ow), (h*W+w)] = Rh[h,oh] * Rw[w,ow]   (separable bilinear upsample)
    UT = jnp.einsum('ho,wp->ophw', jnp.asarray(Rh), jnp.asarray(Rw),
                    precision=hi).reshape(P, HW)
    # Tridiagonal matrix for Conv1d(1,1,3,padding=1) along channels: z = y @ T + b1d
    T = (w1d[0] * jnp.eye(C, k=1, dtype=jnp.float32)
         + w1d[1] * jnp.eye(C, dtype=jnp.float32)
         + w1d[2] * jnp.eye(C, k=-1, dtype=jnp.float32))

    x_flat = x.reshape(N, C, HW)          # free wrapper reshape -> lane-dense kernel I/O

    # ---- samples per grid step: amortize the ~0.35us/step overhead on small samples ---
    per_sample_bytes = C * HW * 4
    B = 1
    for d in range(1, min(N, 8) + 1):
        if N % d == 0 and d * per_sample_bytes <= (2 << 20):
            B = d
    grid = (N // B,)

    block_bytes = B * C * HW * 4
    const_bytes = 4 * (HW * P + P * HW + C * C)
    # x + out double-buffered, constants single-buffered, plus elementwise temporaries.
    vmem_est = 4 * block_bytes + 2 * const_bytes + 6 * block_bytes + (1 << 20)
    vmem_limit = int(min(max(vmem_est, 32 << 20), 48 << 20))   # safe on v5e/v6e/v7x

    smem = pl.BlockSpec(memory_space=pltpu.MemorySpace.SMEM)
    in_specs = [
        pl.BlockSpec((B, C, HW), lambda n: (n, 0, 0)),   # x: B samples per step
        pl.BlockSpec((HW, P), lambda n: (0, 0)),         # conv-as-matmul matrix (resident)
        pl.BlockSpec((P, HW), lambda n: (0, 0)),         # bilinear-upsample matrix (resident)
        pl.BlockSpec((C, C), lambda n: (0, 0)),          # channel conv1d tridiagonal
        smem, smem,                                      # b7, b1d scalars
    ]
    out_specs = pl.BlockSpec((B, C, HW), lambda n: (n, 0, 0))

    cost = pl.CostEstimate(
        flops=int(N * C * HW * 10 + N * (2 * HW * P + 2 * P * HW + 2 * C * C)),
        transcendentals=int(N * C * HW + N * C),
        bytes_accessed=int(2 * N * C * HW * 4 + const_bytes),
    )

    out_flat = pl.pallas_call(
        _ramm2_kernel,
        grid=grid,
        in_specs=in_specs,
        out_specs=out_specs,
        out_shape=jax.ShapeDtypeStruct((N, C, HW), jnp.float32),
        compiler_params=pltpu.CompilerParams(
            dimension_semantics=("parallel",),           # megacore sharding on v7x
            vmem_limit_bytes=vmem_limit),
        cost_estimate=cost,
    )(x_flat, K, UT, T, b7, b1d)
    return out_flat.reshape(N, C, H, W)


def ramm2_reference(x, w7, b7, w1d, b1d, Rh, RwT):
    """Pure-JAX reference mirroring the PyTorch forward."""
    N, C, H, W = x.shape
    mu = jnp.mean(x, axis=(2, 3), keepdims=True)
    var = jnp.mean((x - mu) ** 2, axis=(2, 3), keepdims=True)
    y = (jnp.sqrt(var) + mu)[..., 0, 0]                       # (N, C)
    ypad = jnp.pad(y, ((0, 0), (1, 1)))
    z = w1d[0] * ypad[:, :-2] + w1d[1] * ypad[:, 1:-1] + w1d[2] * ypad[:, 2:] + b1d[0]
    ca = x * jax.nn.sigmoid(z)[:, :, None, None]
    sa_mean = jnp.mean(x, axis=1)                             # (N, H, W)
    Ho = (H - KH) // STRIDE + 1
    Wo = (W - KW) // STRIDE + 1
    conv = jnp.zeros((N, Ho, Wo), jnp.float32)
    for kh in range(KH):
        for kw in range(KW):
            conv = conv + w7[kh, kw] * sa_mean[:, kh:kh + STRIDE * Ho:STRIDE,
                                               kw:kw + STRIDE * Wo:STRIDE]
    conv = conv + b7[0]
    sa = jnp.einsum('ho,noq,qw->nhw', Rh, conv, RwT,
                    precision=jax.lax.Precision.HIGHEST)
    att = jax.nn.sigmoid(ca + sa[:, None, :, :])
    return x * att


if __name__ == "__main__":
    N, C, H, W = 2, 4, 16, 16
    key = jax.random.PRNGKey(0)
    kx, k1, k2, k3, k4 = jax.random.split(key, 5)
    x = jax.random.normal(kx, (N, C, H, W), jnp.float32)
    # deterministic synthetic parameters (shapes from the module __init__):
    w7 = jax.random.normal(k1, (KH, KW), jnp.float32) * 0.1   # Conv2d(1,1,7,stride=3).weight
    b7 = jax.random.normal(k2, (1,), jnp.float32) * 0.1       # Conv2d bias
    w1d = jax.random.normal(k3, (3,), jnp.float32) * 0.5      # Conv1d(1,1,3,padding=1).weight
    b1d = jax.random.normal(k4, (1,), jnp.float32) * 0.1      # Conv1d bias

    out = jax.block_until_ready(ramm2_forward(x, w7, b7, w1d, b1d))

    Ho = (H - KH) // STRIDE + 1
    Wo = (W - KW) // STRIDE + 1
    Rh = jnp.asarray(_bilinear_matrix(H, Ho))
    RwT = jnp.asarray(_bilinear_matrix(W, Wo).T)
    ref = jax.block_until_ready(ramm2_reference(x, w7, b7, w1d, b1d, Rh, RwT))

    if not np.allclose(np.asarray(out), np.asarray(ref), atol=2e-3, rtol=2e-3):
        raise AssertionError("Pallas kernel does not match reference")
    print("KERNEL_OK")
</pallas_src>

<mosaic_0001>
module attributes {stable_mosaic.version = 11 : i64} {
  func.func @_ramm2_kernel(%arg0: i32, %arg1: memref<2x4x256xf32, #tpu.memory_space<vmem>>, %arg2: memref<256x16xf32, #tpu.memory_space<vmem>>, %arg3: memref<16x256xf32, #tpu.memory_space<vmem>>, %arg4: memref<4x4xf32, #tpu.memory_space<vmem>>, %arg5: memref<1xf32, #tpu.memory_space<smem>>, %arg6: memref<1xf32, #tpu.memory_space<smem>>, %arg7: memref<2x4x256xf32, #tpu.memory_space<vmem>>) attributes {dimension_semantics = [#tpu.dimension_semantics<parallel>], iteration_bounds = array<i64: 1>, scalar_prefetch = 0 : i64, scratch_operands = 0 : i64, tpu.core_type = #tpu.core_type<tc>, window_params = [{transform_indices = @transform_0, window_bounds = array<i64: 2, 4, 256>}, {pipeline_mode = #tpu.pipeline_mode<synchronous>, transform_indices = @transform_1, window_bounds = array<i64: 256, 16>}, {pipeline_mode = #tpu.pipeline_mode<synchronous>, transform_indices = @transform_2, window_bounds = array<i64: 16, 256>}, {pipeline_mode = #tpu.pipeline_mode<synchronous>, transform_indices = @transform_3, window_bounds = array<i64: 4, 4>}, {transform_indices = @transform_4, window_bounds = array<i64: 1>}, {transform_indices = @transform_5, window_bounds = array<i64: 1>}, {transform_indices = @transform_6, window_bounds = array<i64: 2, 4, 256>}]} {
    %c0 = arith.constant 0 : index
    %c0_0 = arith.constant 0 : index
    %c0_1 = arith.constant 0 : index
    %0 = vector.load %arg1[%c0, %c0_0, %c0_1] : memref<2x4x256xf32, #tpu.memory_space<vmem>>, vector<2x4x256xf32>
    %cst = arith.constant dense<0.000000e+00> : vector<2x4xf32>
    %1 = vector.multi_reduction <add>, %0, %cst [2] : vector<2x4x256xf32> to vector<2x4xf32>
    %2 = arith.mulf %0, %0 : vector<2x4x256xf32>
    %cst_2 = arith.constant dense<0.000000e+00> : vector<2x4xf32>
    %3 = vector.multi_reduction <add>, %2, %cst_2 [2] : vector<2x4x256xf32> to vector<2x4xf32>
    %cst_3 = arith.constant 3.906250e-03 : f32
    %4 = vector.broadcast %cst_3 : f32 to vector<2x4xf32>
    %5 = arith.mulf %1, %4 : vector<2x4xf32>
    %cst_4 = arith.constant 3.906250e-03 : f32
    %6 = vector.broadcast %cst_4 : f32 to vector<2x4xf32>
    %7 = arith.mulf %3, %6 : vector<2x4xf32>
    %8 = arith.mulf %5, %5 : vector<2x4xf32>
    %9 = arith.subf %7, %8 : vector<2x4xf32>
    %cst_5 = arith.constant 0.000000e+00 : f32
    %10 = vector.broadcast %cst_5 : f32 to vector<2x4xf32>
    %11 = arith.maximumf %9, %10 : vector<2x4xf32>
    %12 = math.sqrt %11 : vector<2x4xf32>
    %13 = arith.addf %12, %5 : vector<2x4xf32>
    %c0_6 = arith.constant 0 : index
    %c0_7 = arith.constant 0 : index
    %14 = vector.load %arg4[%c0_6, %c0_7] : memref<4x4xf32, #tpu.memory_space<vmem>>, vector<4x4xf32>
    %cst_8 = arith.constant dense<0.000000e+00> : vector<2x4xf32>
    %15 = tpu.matmul %13, %14, %cst_8 {dimension_numbers = #tpu.dot_dimension_numbers<[1], [0], [0], [1], [0, 0, 1, 1], [], []>, precision = #tpu.contract_precision<fp32>} : vector<2x4xf32>, vector<4x4xf32>, vector<2x4xf32> -> vector<2x4xf32>
    %c0_9 = arith.constant 0 : index
    %16 = memref.load %arg6[%c0_9] : memref<1xf32, #tpu.memory_space<smem>>
    %17 = vector.broadcast %16 : f32 to vector<2x4xf32>
    %18 = arith.addf %15, %17 : vector<2x4xf32>
    %19 = arith.negf %18 : vector<2x4xf32>
    %20 = math.exp %19 : vector<2x4xf32>
    %cst_10 = arith.constant 1.000000e+00 : f32
    %21 = vector.broadcast %cst_10 : f32 to vector<2x4xf32>
    %22 = arith.addf %21, %20 : vector<2x4xf32>
    %23 = arith.divf %21, %22 : vector<2x4xf32>
    %cst_11 = arith.constant dense<0.000000e+00> : vector<2x256xf32>
    %24 = vector.multi_reduction <add>, %0, %cst_11 [1] : vector<2x4x256xf32> to vector<2x256xf32>
    %cst_12 = arith.constant 2.500000e-01 : f32
    %25 = vector.broadcast %cst_12 : f32 to vector<2x256xf32>
    %26 = arith.mulf %24, %25 : vector<2x256xf32>
    %c0_13 = arith.constant 0 : index
    %c0_14 = arith.constant 0 : index
    %27 = vector.load %arg2[%c0_13, %c0_14] : memref<256x16xf32, #tpu.memory_space<vmem>>, vector<256x16xf32>
    %cst_15 = arith.constant dense<0.000000e+00> : vector<2x16xf32>
    %28 = tpu.matmul %26, %27, %cst_15 {dimension_numbers = #tpu.dot_dimension_numbers<[1], [0], [0], [1], [0, 0, 1, 1], [], []>} : vector<2x256xf32>, vector<256x16xf32>, vector<2x16xf32> -> vector<2x16xf32>
    %c0_16 = arith.constant 0 : index
    %29 = memref.load %arg5[%c0_16] : memref<1xf32, #tpu.memory_space<smem>>
    %30 = vector.broadcast %29 : f32 to vector<2x16xf32>
    %31 = arith.addf %28, %30 : vector<2x16xf32>
    %c0_17 = arith.constant 0 : index
    %c0_18 = arith.constant 0 : index
    %32 = vector.load %arg3[%c0_17, %c0_18] : memref<16x256xf32, #tpu.memory_space<vmem>>, vector<16x256xf32>
    %cst_19 = arith.constant dense<0.000000e+00> : vector<2x256xf32>
    %33 = tpu.matmul %31, %32, %cst_19 {dimension_numbers = #tpu.dot_dimension_numbers<[1], [0], [0], [1], [0, 0, 1, 1], [], []>} : vector<2x16xf32>, vector<16x256xf32>, vector<2x256xf32> -> vector<2x256xf32>
    %34 = vector.shape_cast %23 : vector<2x4xf32> to vector<2x4x1xf32>
    %35 = vector.broadcast %34 : vector<2x4x1xf32> to vector<2x4x256xf32>
    %36 = arith.mulf %0, %35 : vector<2x4x256xf32>
    %37 = vector.shape_cast %33 : vector<2x256xf32> to vector<2x1x256xf32>
    %38 = vector.broadcast %37 : vector<2x1x256xf32> to vector<2x4x256xf32>
    %39 = arith.addf %36, %38 : vector<2x4x256xf32>
    %40 = arith.negf %39 : vector<2x4x256xf32>
    %41 = math.exp %40 : vector<2x4x256xf32>
    %cst_20 = arith.constant 1.000000e+00 : f32
    %42 = vector.broadcast %cst_20 : f32 to vector<2x4x256xf32>
    %43 = arith.addf %42, %41 : vector<2x4x256xf32>
    %44 = arith.divf %42, %43 : vector<2x4x256xf32>
    %45 = arith.mulf %0, %44 : vector<2x4x256xf32>
    %c0_21 = arith.constant 0 : index
    %c0_22 = arith.constant 0 : index
    %c0_23 = arith.constant 0 : index
    %46 = vector.load %arg7[%c0_21, %c0_22, %c0_23] : memref<2x4x256xf32, #tpu.memory_space<vmem>>, vector<2x4x256xf32>
    tpu.vector_store %arg7[%c0_21, %c0_22, %c0_23], %45 {strides = array<i32>} : memref<2x4x256xf32, #tpu.memory_space<vmem>>, vector<2x4x256xf32>,
    return
  }
  func.func @transform_0(%arg0: i32) -> (i32, i32, i32) {
    %c0_i32 = arith.constant 0 : i32
    %c0_i32_0 = arith.constant 0 : i32
    %c0_i32_1 = arith.constant 0 : i32
    return %arg0, %c0_i32, %c0_i32_0 : i32, i32, i32
  }
  func.func @transform_1(%arg0: i32) -> (i32, i32) {
    %c0_i32 = arith.constant 0 : i32
    %c0_i32_0 = arith.constant 0 : i32
    %c0_i32_1 = arith.constant 0 : i32
    return %c0_i32, %c0_i32_0 : i32, i32
  }
  func.func @transform_2(%arg0: i32) -> (i32, i32) {
    %c0_i32 = arith.constant 0 : i32
    %c0_i32_0 = arith.constant 0 : i32
    %c0_i32_1 = arith.constant 0 : i32
    return %c0_i32, %c0_i32_0 : i32, i32
  }
  func.func @transform_3(%arg0: i32) -> (i32, i32) {
    %c0_i32 = arith.constant 0 : i32
    %c0_i32_0 = arith.constant 0 : i32
    %c0_i32_1 = arith.constant 0 : i32
    return %c0_i32, %c0_i32_0 : i32, i32
  }
  func.func @transform_4(%arg0: i32) -> i32 {
    %c0_i32 = arith.constant 0 : i32
    %c0_i32_0 = arith.constant 0 : i32
    return %c0_i32 : i32
  }
  func.func @transform_5(%arg0: i32) -> i32 {
    %c0_i32 = arith.constant 0 : i32
    %c0_i32_0 = arith.constant 0 : i32
    return %c0_i32 : i32
  }
  func.func @transform_6(%arg0: i32) -> (i32, i32, i32) {
    %c0_i32 = arith.constant 0 : i32
    %c0_i32_0 = arith.constant 0 : i32
    %c0_i32_1 = arith.constant 0 : i32
    return %arg0, %c0_i32, %c0_i32_0 : i32, i32, i32
  }
}

</mosaic_0001>

<bundles_post_ra>
// kernel: tpu_custom_call.1
= control target key start
LH: loop header
LB: loop body
LE: loop exit
PB: predicated region body
PF: predicated region fallthrough
CT: control target
= control target key end

     0   :  { %vm34_vm0 = vcmask 1043456   ;;  %s1312_s0 = inlined_call_operand.vmem [shape: f32[2,4,256], index: 0, kind: input, shape index: {}]   ;;  %s1313_s1 = inlined_call_operand.vmem [shape: f32[256,16], index: 1, kind: input, shape index: {}]   ;;  %s1314_s2 = inlined_call_operand.vmem [shape: f32[16,256], index: 2, kind: input, shape index: {}]   ;;  %s1315_s3 = inlined_call_operand.vmem [shape: f32[4,4], index: 3, kind: input, shape index: {}]   ;;  %s1316_s4 = inlined_call_operand.<no memory space> [shape: f32[1], index: 4, kind: input, shape index: {}]   ;;  %s1317_s5 = inlined_call_operand.<no memory space> [shape: f32[1], index: 5, kind: input, shape index: {}]   ;;  %s1318_s6 = inlined_call_operand.hbm [shape: f32[2,4,256], index: 6, kind: output, shape index: {}]  }
   0x1   :  { %v1118_v0 = vld [vmem:[%s1312_s0] sm:$0xff]  ;;  %v1123_v1 = vld [vmem:[%s1312_s0 + $0x8] sm:$0xff]  ;;  %v610_v22 = vld [vmem:[%s1313_s1 + $0x90] sm:$0xff] }
   0x2   :  { %v608_v2 = vld [vmem:[%s1313_s1 + $0x80] sm:$0xff]  ;;  %v30_v3 = vcombine.high %v1118_v0, %v1118_v0  ;;  %v35_v4 = vsel %vm34_vm0, %v1118_v0, 0.0  ;;  %v45_v5 = vmul.f32 %v1118_v0, %v1118_v0  ;;  %v31_v6 = vcombine.high %v1123_v1, %v1123_v1  ;;  %v609_v7 = vld [vmem:[%s1313_s1 + $0x88] sm:$0xff]  ;;  %v611_v23 = vld [vmem:[%s1313_s1 + $0x98] sm:$0xff] }
   0x3   :  { %v40_v8 = vsel %vm34_vm0, %v1123_v1, 0.0  ;;  %v46_v9 = vmul.f32 %v1123_v1, %v1123_v1  ;;  %v977_v10 = vpack.c.bf16 %v609_v7, %v608_v2  ;;  %v592_v17 = vld [vmem:[%s1313_s1] sm:$0xff]  ;;  %v593_v18 = vld [vmem:[%s1313_s1 + $0x8] sm:$0xff]  ;;  %v594_v28 = vld [vmem:[%s1313_s1 + $0x10] sm:$0xff]  ;;  %v564_v35 = vrot.slane %v35_v4, 4 }
   0x4   :  { %v36_v11 = vsel %vm34_vm0, %v30_v3, 0.0  ;;  %v49_v12 = vcombine.high %v45_v5, %v45_v5  ;;  %v53_v13 = vsel %vm34_vm0, %v45_v5, 0.0  ;;  %v41_v14 = vsel %vm34_vm0, %v31_v6, 0.0  ;;  %v595_v29 = vld [vmem:[%s1313_s1 + $0x18] sm:$0xff]  ;;  %v612_v33 = vld [vmem:[%s1313_s1 + $0xa0] sm:$0xff]  ;;  %v613_v34 = vld [vmem:[%s1313_s1 + $0xa8] sm:$0xff] }
   0x5   :  { %v37_v15 = vadd.f32 %v36_v11, %v35_v4  ;;  %v570_v16 = vrot.slane %v36_v11, 4  ;;  %978 = vmatprep.subr.bf16.mxu1 %v977_v10  ;;  %v582_v20 = vrot.slane %v41_v14, 4  ;;  %v50_v21 = vcombine.high %v46_v9, %v46_v9  ;;  %v596_v44 = vld [vmem:[%s1313_s1 + $0x20] sm:$0xff]  ;;  %v597_v45 = vld [vmem:[%s1313_s1 + $0x28] sm:$0xff]  ;;  %v614_v46 = vld [vmem:[%s1313_s1 + $0xb0] sm:$0xff] }
   0x6   :  { %v54_v19 = vsel %vm34_vm0, %v49_v12, 0.0  ;;  %v42_v26 = vadd.f32 %v41_v14, %v40_v8  ;;  %v58_v27 = vsel %vm34_vm0, %v46_v9, 0.0  ;;  %v979_v32 = vpack.c.bf16 %v593_v18, %v592_v17  ;;  %v615_v47 = vld [vmem:[%s1313_s1 + $0xb8] sm:$0xff] }
   0x7   :  { %v571_v24 = vadd.f32 %v570_v16, %v36_v11  ;;  %38 = vadd.xlane.f32.xlu0 %v37_v15  ;;  %v55_v25 = vadd.f32 %v54_v19, %v53_v13  ;;  %v583_v30 = vadd.f32 %v582_v20, %v41_v14  ;;  %v59_v31 = vsel %vm34_vm0, %v50_v21, 0.0 }
   0x8   :  { %v60_v37 = vadd.f32 %v59_v31, %v58_v27  ;;  %v981_v38 = vpack.c.bf16 %v611_v23, %v610_v22  ;;  %v576_v39 = vrot.slane %v40_v8, 4  ;;  %980 = vmatpush3.bf16.msra.mxu1 %v979_v32  ;;  %v983_v41 = vpack.c.bf16 %v595_v29, %v594_v28 }
   0x9   :  { %v572_v36 = vrot.slane %v571_v24, 2  ;;  %56 = vadd.xlane.f32.xlu1 %v55_v25  ;;  %v584_v40 = vrot.slane %v583_v30, 2  ;;  %v985_v43 = vpack.c.bf16 %v613_v34, %v612_v33 }
   0xa   :  { %982 = vmatprep.subr.bf16.mxu1 %v981_v38 }
   0xb   :  { %v573_v42 = vadd.f32 %v572_v36, %v571_v24  ;;  %43 = vadd.xlane.f32.xlu0 %v42_v26 }
   0xc   :  { %13 = vsyncpa [#allocation5], 0  ;;  %v565_v48 = vadd.f32 %v564_v35, %v35_v4  ;;  %v577_v49 = vadd.f32 %v576_v39, %v40_v8  ;;  %984 = vmatpush3.bf16.msra.mxu1 %v983_v41  ;;  %v987_v50 = vpack.c.bf16 %v597_v45, %v596_v44  ;;  %v585_v52 = vadd.f32 %v584_v40, %v583_v30  ;;  %v598_v54 = vld [vmem:[%s1313_s1 + $0x30] sm:$0xff]  ;;  %v599_v55 = vld [vmem:[%s1313_s1 + $0x38] sm:$0xff] }
   0xd   :  { %61 = vadd.xlane.f32.xlu1 %v60_v37  ;;  %v574_v51 = vrot.slane %v573_v42, 1  ;;  %986 = vmatprep.subr.bf16.mxu1 %v985_v43  ;;  %v989_v53 = vpack.c.bf16 %v615_v47, %v614_v46  ;;  %v616_v56 = vld [vmem:[%s1313_s1 + $0xc0] sm:$0xff]  ;;  %v617_v57 = vld [vmem:[%s1313_s1 + $0xc8] sm:$0xff]  ;;  %v991_v62 = vpack.c.bf16 %v599_v55, %v598_v54  ;;  %vm104_vm1 = vcmask 1041409   ;;  %v618_v6 = vld [vmem:[%s1313_s1 + $0xd0] sm:$0xff] }
   0xe   :  { %v586_v59 = vrot.slane %v585_v52, 1  ;;  %v566_v60 = vrot.slane %v565_v48, 2  ;;  %v578_v61 = vrot.slane %v577_v49, 2  ;;  %v993_v3 = vpack.c.bf16 %v617_v57, %v616_v56  ;;  %v600_v4 = vld [vmem:[%s1313_s1 + $0x40] sm:$0xff]  ;;  %v601_v5 = vld [vmem:[%s1313_s1 + $0x48] sm:$0xff]  ;;  %v619_v7 = vld [vmem:[%s1313_s1 + $0xd8] sm:$0xff] }
   0xf   :  { %v575_v58 = vadd.f32 %v574_v51, %v573_v42  ;;  %v995_v11 = vpack.c.bf16 %v601_v5, %v600_v4  ;;  %v997_v13 = vpack.c.bf16 %v619_v7, %v618_v6  ;;  %v602_v14 = vld [vmem:[%s1313_s1 + $0x50] sm:$0xff]  ;;  %v603_v15 = vld [vmem:[%s1313_s1 + $0x58] sm:$0xff]  ;;  %v620_v16 = vld [vmem:[%s1313_s1 + $0xe0] sm:$0xff]  ;;  %v1073_v37 = vmov 0.0  }
  0x10   :  { %988 = vmatpush3.bf16.msra.mxu1 %v987_v50  ;;  %v587_v63 = vadd.f32 %v586_v59, %v585_v52  ;;  %v567_v9 = vadd.f32 %v566_v60, %v565_v48  ;;  %v579_v10 = vadd.f32 %v578_v61, %v577_v49  ;;  %v621_v17 = vld [vmem:[%s1313_s1 + $0xe8] sm:$0xff]  ;;  %v999_v19 = vpack.c.bf16 %v603_v15, %v602_v14  ;;  %v604_v22 = vld [vmem:[%s1313_s1 + $0x60] sm:$0xff]  ;;  %v622_v24 = vld [vmem:[%s1313_s1 + $0xf0] sm:$0xff] }
  0x11   :  { %v589_v2 = vmul.f32 0.25, %v575_v58  ;;  %990 = vmatprep.subr.bf16.mxu1 %v989_v53  ;;  %v1001_v21 = vpack.c.bf16 %v621_v17, %v620_v16  ;;  %v605_v23 = vld [vmem:[%s1313_s1 + $0x68] sm:$0xff]  ;;  %v623_v25 = vld [vmem:[%s1313_s1 + $0xf8] sm:$0xff]  ;;  %v606_v30 = vld [vmem:[%s1313_s1 + $0x70] sm:$0xff]  ;;  %947 = vmatprep.subr.mxu0 %v1073_v37  ;;  %vm1074_vm2 = vmmov 0   ;;  %v94_v54 = vlaneseq }
  0x12   :  { %v591_v8 = vmul.f32 0.25, %v587_v63  ;;  %v568_v18 = vrot.slane %v567_v9, 1  ;;  %v580_v20 = vrot.slane %v579_v10, 1  ;;  %v1003_v26 = vpack.c.bf16 %v605_v23, %v604_v22  ;;  %v607_v31 = vld [vmem:[%s1313_s1 + $0x78] sm:$0xff]  ;;  %v89_v36 = vld [vmem:[%s1315_s3] sm:$0xf]  ;;  %949 = vmatprep.mubr.msk.f32.mxu0 %vm1074_vm2, %v1073_v37 }
  0x13   :  { %v1005_v29 = vpack.c.bf16 %v623_v25, %v622_v24  ;;  %v1007_v32 = vpack.c.bf16 %v607_v31, %v606_v30  ;;  %v110_v38 = vsel %vm34_vm0, %v89_v36, 0  ;;  %v95_v59 = vand.u32 127, %v94_v54  ;;  %v707_v22 = vld [vmem:[%s1314_s2 + $0x18] sm:$0xff]  ;;  %v704_v24 = vld [vmem:[%s1314_s2] sm:$0xff]  ;;  %v706_v25 = vld [vmem:[%s1314_s2 + $0x10] sm:$0xff] }
  0x14   :  { %992 = vmatpush3.bf16.msra.mxu1 %v991_v62  ;;  %v631_v12 = vsel %vm104_vm1, %v591_v8, %v589_v2  ;;  %v569_v27 = vadd.f32 %v568_v18, %v567_v9  ;;  %v581_v28 = vadd.f32 %v580_v20, %v579_v10  ;;  %v1248_v39 = vand.u32 4294901760, %v110_v38 }
  0x15   :  { %994 = vmatprep.subr.bf16.mxu1 %v993_v3  ;;  %698 = vmatprep.mubr.f32.mxu1 %v631_v12  ;;  %v1252_v60 = vshrl.u32 %v94_v54, 7  ;;  %vm106_vm7 = vcmask 31744   ;;  %vm708_vm8 = vcmask 130048  }
  0x16   :  { %v588_v33 = vmul.f32 0.25, %v569_v27  ;;  %v590_v34 = vmul.f32 0.25, %v581_v28  ;;  %948 = vmatpush3.msra.mxu0 %v1248_v39  ;;  %v190_v8 = vsub.f32 %v110_v38, %v1248_v39  ;;  %v625_v28 = vstv %s1316_s4 }
  0x17   :  { %952 = vmatprep.subr.mxu0 %v1073_v37  ;;  %v98_v5 = vsub.s32 %v95_v59, %v1252_v60 }
  0x18   :  { %996 = vmatpush3.bf16.msra.mxu1 %v995_v11  ;;  %v630_v35 = vsel %vm104_vm1, %v590_v34, %v588_v33 }
  0x19   :  { %998 = vmatprep.subr.bf16.mxu1 %v997_v13  ;;  %v191_v13 = vand.u32 4294901760, %v190_v8 }
  0x1b   :  { %v192_v16 = vsub.f32 %v190_v8, %v191_v13 }
  0x1c   :  { %1000 = vmatpush3.bf16.msra.mxu1 %v999_v19 }
  0x1d   :  { %1002 = vmatprep.subr.bf16.mxu1 %v1001_v21  ;;  %v193_v19 = vand.u32 4294901760, %v192_v16  ;;  %v705_v21 = vld [vmem:[%s1314_s2 + $0x8] sm:$0xff]  ;;  %s1077_s2 = smov [#allocation4]  }
  0x1e   :  { %v1009_v23 = vpack.c.bf16 %v707_v22, %v705_v21  ;;  %s885_s4 = sshll.u32 %s1077_s2, 4  ;;  %s886_s4 = int_to_ptr.vmem [resolvable:$true] %s885_s4 }
  0x1f   :  { %p1054_p1 = scmp.lt.s32.totalorder %s886_s4, %s886_s4 }
  0x20   :  { %1004 = vmatpush3.bf16.msra.mxu1 %v1003_v26  ;;  %v1011_v26 = vpack.c.bf16 %v706_v25, %v704_v24 }
  0x21   :  { %1006 = vmatprep.subr.bf16.mxu1 %v1005_v29 }
  0x24   :  { %1008 = vmatpush3.bf16.msra.mxu1 %v1007_v32  ;;  %v91_v32 = vstv %s1317_s5  ;;  %s1049_s5 = scalar_lea.vmem %s886_s4, 256 }
  0x25   :  { %p1050_p0 = scmp.ne.s32.totalorder %s886_s4, %s1049_s5  ;;  %p1055_p2 = scmp.lt.s32.totalorder %s1049_s5, %s1049_s5 }
  0x27   :  { %699 = vmatmul.mubr.f32.vlgmr.msra.gmra.mrb[0].mxu1 %v630_v35  ;;  %p1056_p3 = por %p1055_p2, %p1054_p1 }
  0x29   :  { %p1057_p4 = pnand %p1056_p3, %p1050_p0 }
  0x94   :  { %v39_v40 = vpop.xlane.xlu0 %38 }
  0x95   :  { %v63_v41 = vmul.f32 0.00390625, %v39_v40 }
  0x96   :  { %v57_v42 = vpop.xlane.xlu1 %56 }
  0x97   :  { %v67_v43 = vmul.f32 %v63_v41, %v63_v41  ;;  %v65_v44 = vmul.f32 0.00390625, %v57_v42  ;;  %v792_v42 = vsub.s32 1, %v1252_v60 }
  0x98   :  { %v44_v45 = vpop.xlane.xlu0 %43 }
  0x99   :  { %v69_v46 = vsub.f32 %v65_v44, %v67_v43  ;;  %v64_v47 = vmul.f32 0.00390625, %v44_v45  ;;  %v785_v43 = vsub.s32 0, %v1252_v60 }
  0x9a   :  { %v62_v48 = vpop.xlane.xlu1 %61 }
  0x9b   :  { %v71_v49 = vmax.f32 %v69_v46, 0.0  ;;  %v68_v50 = vmul.f32 %v64_v47, %v64_v47  ;;  %v66_v51 = vmul.f32 0.00390625, %v62_v48 }
  0x9d   :  { %1033 = vrsqrt.f32 %v71_v49  ;;  %v70_v52 = vsub.f32 %v66_v51, %v68_v50  ;;  %vm75_vm3 = vcmp.eq.f32.partialorder %v71_v49, inf  ;;  %v78_v57 = vand.u32 2147483648, %v71_v49 }
  0x9e   :  { %vm77_vm4 = vcmp.eq.f32.partialorder %v71_v49, 0.0 }
  0x9f   :  { %v72_v53 = vmax.f32 %v70_v52, 0.0 }
  0xa1   :  { %1035 = vrsqrt.f32 %v72_v53  ;;  %vm82_vm5 = vcmp.eq.f32.partialorder %v72_v53, inf  ;;  %v85_v2 = vand.u32 2147483648, %v72_v53  ;;  %vm84_vm6 = vcmp.eq.f32.partialorder %v72_v53, 0.0 }
  0xa7   :  { %v1034_v55 = vpop.eup %1033 }
  0xa8   :  { %v74_v56 = vmul.f32 %v1034_v55, %v71_v49 }
  0xaa   :  { %v76_v58 = vsel %vm75_vm3, %v71_v49, %v74_v56 }
  0xab   :  { %v1036_v61 = vpop.eup %1035  ;;  %v79_v62 = vsel %vm77_vm4, %v78_v57, %v76_v58 }
  0xac   :  { %v81_v63 = vmul.f32 %v1036_v61, %v72_v53  ;;  %v87_v4 = vadd.f32 %v79_v62, %v63_v41  ;;  %v1076_v62 = vmov 839922192  }
  0xae   :  { %v83_v3 = vsel %vm82_vm5, %v72_v53, %v81_v63  ;;  %v99_v9 = vrot.slane %v87_v4, %v98_v5  ;;  %v800_v63 = vunpack.c.l.s4 %v1076_v62 }
  0xaf   :  { %v86_v6 = vsel %vm84_vm6, %v85_v2, %v83_v3 }
  0xb0   :  { %v88_v7 = vadd.f32 %v86_v6, %v64_v47  ;;  %v801_v2 = vunpack.c.0.s8 %v800_v63 }
  0xb2   :  { %v103_v10 = vrot.slane %v88_v7, %v98_v5  ;;  %v804_v3 = vsub.s32 %v801_v2, %v1252_v60 }
  0xb4   :  { %v105_v11 = vsel %vm104_vm1, %v103_v10, %v99_v9 }
  0xb5   :  { %v107_v12 = vsel %vm106_vm7, %v105_v11, 0 }
  0xb6   :  { %v178_v14 = vand.u32 4294901760, %v107_v12 }
  0xb8   :  { %v179_v15 = vsub.f32 %v107_v12, %v178_v14 }
  0xba   :  { %v180_v17 = vand.u32 4294901760, %v179_v15 }
  0xbc   :  { %v181_v18 = vsub.f32 %v179_v15, %v180_v17 }
  0xbe   :  { %v182_v20 = vand.u32 4294901760, %v181_v18 }
  0xc0   :  { %950 = vmatmul.mubr.f32.vlgmr.msra.gmra.mrb[0].mxu0 %v182_v20 }
  0xc1   :  { %953 = vmatpush3.msra.mxu0 %v193_v19  ;;  %954 = vmatprep.mubr.msk.f32.mxu0 %vm1074_vm2, %v1073_v37 }
  0xc2   :  { %957 = vmatprep.subr.mxu0 %v1073_v37 }
  0xc8   :  { %955 = vmatmul.mubr.f32.vlgmr.msra.gmra.mrb[0].mxu0 %v178_v14 }
  0xc9   :  { %958 = vmatpush3.msra.mxu0 %v190_v8  ;;  %959 = vmatprep.mubr.msk.f32.mxu0 %vm1074_vm2, %v1073_v37 }
  0xca   :  { %962 = vmatprep.subr.mxu0 %v1073_v37 }
  0xd0   :  { %960 = vmatmul.mubr.f32.vlgmr.msra.gmra.mrb[0].mxu0 %v179_v15 }
  0xd1   :  { %963 = vmatpush3.msra.mxu0 %v1248_v39  ;;  %964 = vmatprep.mubr.msk.f32.mxu0 %vm1074_vm2, %v1073_v37 }
  0xd2   :  { %967 = vmatprep.subr.mxu0 %v1073_v37 }
  0xd8   :  { %965 = vmatmul.mubr.f32.vlgmr.msra.gmra.mrb[0].mxu0 %v180_v17 }
  0xd9   :  { %968 = vmatpush3.msra.mxu0 %v191_v13  ;;  %969 = vmatprep.mubr.msk.f32.mxu0 %vm1074_vm2, %v1073_v37 }
  0xda   :  { %972 = vmatprep.subr.mxu0 %v1073_v37 }
  0xe0   :  { %970 = vmatmul.mubr.f32.vlgmr.msra.gmra.mrb[0].mxu0 %v178_v14 }
  0xe1   :  { %973 = vmatpush3.msra.mxu0 %v1248_v39  ;;  %974 = vmatprep.mubr.msk.f32.mxu0 %vm1074_vm2, %v1073_v37  ;;  %v1075_v39 = vmov 1966171168  }
  0xe2   :  { %1010 = vmatprep.subr.bf16.mxu0 %v1009_v23  ;;  %v821_v40 = vunpack.c.l.s4 %v1075_v39 }
  0xe4   :  { %v822_v41 = vunpack.c.0.s8 %v821_v40 }
  0xe6   :  { %v825_v45 = vsub.s32 %v822_v41, %v1252_v60 }
  0xe8   :  { %975 = vmatmul.mubr.f32.vlgmr.msra.gmra.mrb[0].mxu0 %v178_v14 }
  0xe9   :  { %1012 = vmatpush1.bf16.msra.mxu0 %v1011_v26  ;;  %776 = vmatprep.mubr.f32.mxu0 %v1073_v37 }
  0xfa   :  { %v944_v27 = vpop.f32.mrb[0].mxu1 }
  0xfb   :  { %v945_v29 = vpop.f32.mrb[1].mxu1 }
  0xfc   :  { %v946_v30 = vadd.f32 %v945_v29, %v944_v27 }
  0xfe   :  { %v701_v31 = vadd.f32 %v946_v30, %v625_v28 }
 0x100   :  { %897 = vmatmul.mubr.msk.f32.vlgmr.msra.gmra.mrb[2].mxu0 %vm708_vm8, %v701_v31 }
 0x1bb   :  { %v554_v33 = vpop.f32.mrb[0].mxu0 }
 0x1bc   :  { %v1013_v34 = vadd.f32 %v554_v33, %v91_v32  ;;  %v976_v35 = vpop.f32.mrb[1].mxu0 }
 0x1be   :  { %v896_v36 = vmul.f32 -1.442695, %v1013_v34 }
 0x1c0   :  { %1037 = vpow2.f32 %v896_v36 }
 0x1ca   :  { %v1038_v37 = vpop.eup %1037 }
 0x1cb   :  { %v561_v38 = vadd.f32 1.0, %v1038_v37 }
 0x1cd   :  { %1039 = vrcp.f32 %v561_v38 }
 0x1d3   :  { %v778_v44 = vpop.f32.mrb[2].mxu0 }
 0x1d4   :  { %v780_v46 = vpop.f32.mrb[3].mxu0 }
 0x1d5   :  { %v819_v48 = vcombine.low %v778_v44, %v780_v46 }
 0x1d7   :  { %v1040_v47 = vpop.eup %1039  ;;  %v826_v51 = vrot.slane %v819_v48, %v825_v45 }
 0x1d8   :  { %v793_v49 = vrot.slane %v1040_v47, %v792_v42  ;;  %v786_v50 = vrot.slane %v1040_v47, %v785_v43 }
 0x1d9   :  { %v827_v52 = vcombine.high %v826_v51, %v826_v51  ;;  %v834_v53 = vrot.slane %v826_v51, %v825_v45 }
 0x1da   :  { %795 = vbcast.lane.b32.xlu1 %v793_v49, 256  ;;  %788 = vbcast.lane.b32.xlu0 %v786_v50, 256 }
 0x1db   :  { %v841_v54 = vrot.slane %v827_v52, %v825_v45  ;;  %v845_v55 = vrot.slane %v834_v53, %v785_v43  ;;  %v849_v56 = vrot.slane %v834_v53, %v792_v42 }
 0x1dd   :  { %v853_v57 = vrot.slane %v841_v54, %v785_v43  ;;  %v857_v58 = vrot.slane %v841_v54, %v792_v42  ;;  %v858_v59 = vcombine.low %v845_v55, %v849_v56 }
 0x1df   :  { %v859_v61 = vcombine.low %v853_v57, %v857_v58 }
 0x24c   :  { %v796_v4 = vpop.permute.xlu1 %795  ;;  %v789_v5 = vpop.permute.xlu0 %788 }
 0x24d   :  { %v812_v6 = vrot.slane %v796_v4, %v804_v3  ;;  %v805_v7 = vrot.slane %v789_v5, %v804_v3 }
 0x24f   :  { %v816_v8 = vmul.f32 %v812_v6, %v1123_v1  ;;  %v815_v9 = vmul.f32 %v805_v7, %v1118_v0 }
 0x251   :  { %v863_v10 = vadd.f32 %v859_v61, %v816_v8  ;;  %v862_v11 = vadd.f32 %v858_v59, %v815_v9 }
 0x253   :  { %v899_v12 = vmul.f32 -1.442695, %v863_v10  ;;  %v898_v13 = vmul.f32 -1.442695, %v862_v11 }
 0x255   :  { %1041 = vpow2.f32 %v899_v12 }
 0x256   :  { %1043 = vpow2.f32 %v898_v13 }
 0x25f   :  { %v1042_v14 = vpop.eup %1041 }
 0x260   :  { %v1044_v15 = vpop.eup %1043  ;;  %v871_v16 = vadd.f32 1.0, %v1042_v14 }
 0x261   :  { %v870_v17 = vadd.f32 1.0, %v1044_v15 }
 0x262   :  { %1045 = vrcp.f32 %v871_v16 }
 0x263   :  { %1047 = vrcp.f32 %v870_v17 }
 0x26c   :  { %v1046_v60 = vpop.eup %1045 }
 0x26d   :  { %v1048_v18 = vpop.eup %1047  ;;  %v877_v19 = vmul.f32 %v1046_v60, %v1123_v1 }
 0x26e   :  { %v876_v20 = vmul.f32 %v1048_v18, %v1118_v0 }
 0x26f   :  { %879 = vst [vmem:[#allocation4 + $0x8] sm:$0xff] %v877_v19 }
 0x270   :  { %878 = vst [vmem:[#allocation4] sm:$0xff] %v876_v20 }
 0x271   :  { %1060 = shalt.err (!%p1057_p4)
}
 0x272   :  { %s1061_s28 = scalar_lea.hbm %s1318_s6, 256 }
 0x273   :  { %p1062_p5 = scmp.ne.s32.totalorder %s1318_s6, %s1061_s28  ;;  %p1065_p6 = scmp.lt.u32.totalorder %s1061_s28, %s1318_s6 }
 0x275   :  { %p1067_p7 = pnand %p1065_p6, %p1062_p5 }
 0x277   :  { %1070 = shalt.err (!%p1067_p7)
}
 0x278   :  { %s1078_s8 = smov 128   ;;  %s1079_s9 = smov 8  }
 0x279   :  { %891 = dma.vmem_to_hbm [thread:$0]  %s886_s4, 256, %s1318_s6, [#allocation5], %s1078_s8, %s1078_s8, %s1079_s9  }
 0x27a   :  { %1071 = dma.done.wait [#allocation5], 256  }
 0x27b   :  { %1072 = vsyncadd [#allocation5], 4294967040 }
 0x27c   :  { %895 = vsyncpa [#allocation5], 1 }

</bundles_post_ra>
